<compile_context>
chip_gen: v6e
topology: v6e:2x2x1
jax: 0.10.0
libtpu: 0.0.40
codegen_flags: <defaults>
</compile_context>

<pallas_src>
import functools

import jax
import jax.numpy as jnp
from jax.experimental import pallas as pl
from jax.experimental.pallas import tpu as pltpu


def _maxpool_kernel(x_ref, w_ref, b_ref, o_ref, acc_ref, *, hw, tile_hw, needs_mask):
    # x_ref:   (1, C, tile_hw)  one batch, one spatial tile (HW in lanes)
    # w_ref:   (K, C)           1x1 conv weight
    # b_ref:   (K, 1)           conv bias
    # o_ref:   (1, K, 1)        per-batch logits
    # acc_ref: (K, tile_hw)     running max accumulator (f32, VMEM scratch)
    s = pl.program_id(1)

    @pl.when(s == 0)
    def _init():
        acc_ref[...] = jnp.full_like(acc_ref, -jnp.inf)

    # 1x1 conv for this spatial tile: (K, C) @ (C, tile_hw) -> (K, tile_hw), f32 accumulate.
    y = jnp.dot(w_ref[...], x_ref[0], preferred_element_type=jnp.float32)

    if needs_mask:
        # Mask the padded tail columns (HW not a multiple of tile_hw) with -inf so the
        # out-of-bounds garbage never wins the max.  Only generated when required.
        col = s * tile_hw + jax.lax.broadcasted_iota(jnp.int32, y.shape, 1)
        y = jnp.where(col < hw, y, -jnp.inf)

    # Running elementwise max (pure VPU).
    acc_ref[...] = jnp.maximum(acc_ref[...], y)

    @pl.when(s == pl.num_programs(1) - 1)
    def _finalize():
        pooled = jnp.max(acc_ref[...], axis=-1, keepdims=True)        # (K, 1)  XLU reduce
        logits = pooled + b_ref[...]                                   # bias after max
        o_ref[...] = logits.reshape(o_ref.shape).astype(o_ref.dtype)


def maxpool_forward(x, weight, bias, support_background=False, tile_hw=None):
    """Pallas implementation of MaxPool.forward.

    x:      (B, C, H, W)  float32  (NCHW, like PyTorch)
    weight: (K, C, 1, 1)  1x1 conv weight (K = classes [+1 if support_background])
    bias:   (K,)
    returns logits of shape (B, classes)
    """
    B, C, H, W = x.shape
    K = weight.shape[0]
    HW = H * W

    # Free views only (no HBM-side transpose / copy).
    x3d = x.reshape(B, C, HW)          # (B, C, HW)  -- contiguous view of NCHW
    w2d = weight.reshape(K, C)         # (K, C)
    b2d = bias.reshape(K, 1)           # (K, 1)

    # Pick a lane-aligned spatial tile.  Double-buffered input tiles (2 * C * tile * 4B)
    # must stay well under every generation's scoped-VMEM default (v5e 16 MiB,
    # v6e/v7x 32 MiB); within that, bigger tiles amortize per-step overhead and sit
    # closer to the HBM roofline plateau (~tile 512-2048).
    if tile_hw is None:
        if HW <= 128:
            tile_hw = HW
        else:
            budget = 8 * 1024 * 1024                       # 2 bufs * C * tile * 4B <= budget
            cap = max(128, (budget // (2 * C * 4)) // 128 * 128)
            tile_hw = min(2048, cap, pl.cdiv(HW, 128) * 128)
    n_spatial = pl.cdiv(HW, tile_hw)
    needs_mask = (HW % tile_hw) != 0

    kernel = functools.partial(_maxpool_kernel, hw=HW, tile_hw=tile_hw,
                               needs_mask=needs_mask)

    flops = 2 * B * HW * C * K
    bytes_accessed = 4 * (B * HW * C + K * C + K + B * K)

    out = pl.pallas_call(
        kernel,
        out_shape=jax.ShapeDtypeStruct((B, K, 1), x.dtype),
        grid_spec=pltpu.PrefetchScalarGridSpec(
            num_scalar_prefetch=0,
            grid=(B, n_spatial),
            in_specs=[
                pl.BlockSpec((1, C, tile_hw), lambda b, s: (b, 0, s)),
                pl.BlockSpec((K, C), lambda b, s: (0, 0)),
                pl.BlockSpec((K, 1), lambda b, s: (0, 0)),
            ],
            out_specs=pl.BlockSpec((1, K, 1), lambda b, s: (b, 0, 0)),
            scratch_shapes=[pltpu.VMEM((K, tile_hw), jnp.float32)],
        ),
        compiler_params=pltpu.CompilerParams(
            dimension_semantics=("parallel", "arbitrary"),
        ),
        cost_estimate=pl.CostEstimate(
            flops=flops, transcendentals=0, bytes_accessed=bytes_accessed),
    )(x3d, w2d, b2d)

    logits = out.reshape(B, K)

    # correct_cl_logits: drop background class column if supported.
    if support_background:
        logits = logits[:, 1:]
    return logits


if __name__ == "__main__":
    key = jax.random.PRNGKey(0)
    kx, kw, kb = jax.random.split(key, 3)

    # Small shapes consistent with the module.
    B, C, H, W = 2, 4, 16, 16
    classes = 3
    support_background = False
    K = classes + 1 if support_background else classes

    x = jax.random.normal(kx, (B, C, H, W), dtype=jnp.float32)

    # Deterministic param init (PyTorch Conv2d default: U(-1/sqrt(fan_in), 1/sqrt(fan_in)))
    bound = 1.0 / jnp.sqrt(jnp.float32(C * 1 * 1))
    weight = jax.random.uniform(kw, (K, C, 1, 1), minval=-bound, maxval=bound,
                                dtype=jnp.float32)
    bias = jax.random.uniform(kb, (K,), minval=-bound, maxval=bound, dtype=jnp.float32)

    # tile_hw=128 on HW=256 -> grid (B, 2): exercises both the running-max accumulation
    # path (multiple spatial steps) and the parallel batch axis.
    logits = maxpool_forward(x, weight, bias,
                             support_background=support_background, tile_hw=128)
    logits = jax.block_until_ready(logits)

    # Pure-JAX reference: 1x1 conv == per-pixel linear, then global max pool.
    ref = jnp.einsum("bchw,kc->bkhw", x, weight.reshape(K, C)) + bias[None, :, None, None]
    ref = jnp.max(ref, axis=(2, 3))
    if support_background:
        ref = ref[:, 1:]

    assert logits.shape == (B, classes), logits.shape
    assert jnp.allclose(logits, ref, atol=1e-5, rtol=1e-5), (
        f"max abs err = {jnp.max(jnp.abs(logits - ref))}"
    )
    print("KERNEL_OK")
</pallas_src>

<mosaic_0001>
module attributes {stable_mosaic.version = 11 : i64} {
  func.func @_maxpool_kernel(%arg0: i32, %arg1: i32, %arg2: memref<1x4x128xf32, #tpu.memory_space<vmem>>, %arg3: memref<3x4xf32, #tpu.memory_space<vmem>>, %arg4: memref<3x1xf32, #tpu.memory_space<vmem>>, %arg5: memref<1x3x1xf32, #tpu.memory_space<vmem>>, %arg6: memref<3x128xf32, #tpu.memory_space<vmem>>) attributes {dimension_semantics = [#tpu.dimension_semantics<parallel>, #tpu.dimension_semantics<arbitrary>], iteration_bounds = array<i64: 2, 2>, scalar_prefetch = 0 : i64, scratch_operands = 1 : i64, tpu.core_type = #tpu.core_type<tc>, window_params = [{transform_indices = @transform_0, window_bounds = array<i64: 1, 4, 128>}, {pipeline_mode = #tpu.pipeline_mode<synchronous>, transform_indices = @transform_1, window_bounds = array<i64: 3, 4>}, {pipeline_mode = #tpu.pipeline_mode<synchronous>, transform_indices = @transform_2, window_bounds = array<i64: 3, 1>}, {transform_indices = @transform_3, window_bounds = array<i64: 1, 3, 1>}]} {
    %c0_i32 = arith.constant 0 : i32
    %0 = arith.cmpi eq, %arg1, %c0_i32 : i32
    %1 = arith.extui %0 : i1 to i32
    %c0_i32_0 = arith.constant 0 : i32
    %2 = arith.cmpi ne, %1, %c0_i32_0 : i32
    scf.if %2 {
      %cst_10 = arith.constant 0xFF800000 : f32
      %13 = vector.broadcast %cst_10 : f32 to vector<3x128xf32>
      %c0_11 = arith.constant 0 : index
      %c0_12 = arith.constant 0 : index
      %14 = vector.load %arg6[%c0_11, %c0_12] : memref<3x128xf32, #tpu.memory_space<vmem>>, vector<3x128xf32>
      tpu.vector_store %arg6[%c0_11, %c0_12], %13 {strides = array<i32>} : memref<3x128xf32, #tpu.memory_space<vmem>>, vector<3x128xf32>,
    } else {
    }
    %c0 = arith.constant 0 : index
    %c0_1 = arith.constant 0 : index
    %3 = vector.load %arg3[%c0, %c0_1] : memref<3x4xf32, #tpu.memory_space<vmem>>, vector<3x4xf32>
    %c0_2 = arith.constant 0 : index
    %c0_3 = arith.constant 0 : index
    %c0_4 = arith.constant 0 : index
    %4 = vector.load %arg2[%c0_2, %c0_3, %c0_4] : memref<1x4x128xf32, #tpu.memory_space<vmem>>, vector<1x4x128xf32>
    %5 = vector.shape_cast %4 : vector<1x4x128xf32> to vector<4x128xf32>
    %cst = arith.constant dense<0.000000e+00> : vector<3x128xf32>
    %6 = tpu.matmul %3, %5, %cst {dimension_numbers = #tpu.dot_dimension_numbers<[1], [0], [0], [1], [0, 0, 1, 1], [], []>} : vector<3x4xf32>, vector<4x128xf32>, vector<3x128xf32> -> vector<3x128xf32>
    %c0_5 = arith.constant 0 : index
    %c0_6 = arith.constant 0 : index
    %7 = vector.load %arg6[%c0_5, %c0_6] : memref<3x128xf32, #tpu.memory_space<vmem>>, vector<3x128xf32>
    %8 = arith.maximumf %7, %6 : vector<3x128xf32>
    %c0_7 = arith.constant 0 : index
    %c0_8 = arith.constant 0 : index
    %9 = vector.load %arg6[%c0_7, %c0_8] : memref<3x128xf32, #tpu.memory_space<vmem>>, vector<3x128xf32>
    tpu.vector_store %arg6[%c0_7, %c0_8], %8 {strides = array<i32>} : memref<3x128xf32, #tpu.memory_space<vmem>>, vector<3x128xf32>,
    %c1_i32 = arith.constant 1 : i32
    %10 = arith.cmpi eq, %arg1, %c1_i32 : i32
    %11 = arith.extui %10 : i1 to i32
    %c0_i32_9 = arith.constant 0 : i32
    %12 = arith.cmpi ne, %11, %c0_i32_9 : i32
    scf.if %12 {
      %c0_10 = arith.constant 0 : index
      %c0_11 = arith.constant 0 : index
      %13 = vector.load %arg6[%c0_10, %c0_11] : memref<3x128xf32, #tpu.memory_space<vmem>>, vector<3x128xf32>
      %cst_12 = arith.constant dense<0xFF800000> : vector<3xf32>
      %14 = vector.multi_reduction <maximumf>, %13, %cst_12 [1] : vector<3x128xf32> to vector<3xf32>
      %15 = vector.shape_cast %14 : vector<3xf32> to vector<3x1xf32>
      %c0_13 = arith.constant 0 : index
      %c0_14 = arith.constant 0 : index
      %16 = vector.load %arg4[%c0_13, %c0_14] : memref<3x1xf32, #tpu.memory_space<vmem>>, vector<3x1xf32>
      %17 = arith.addf %15, %16 : vector<3x1xf32>
      %18 = vector.shape_cast %17 : vector<3x1xf32> to vector<1x3x1xf32>
      %c0_15 = arith.constant 0 : index
      %c0_16 = arith.constant 0 : index
      %c0_17 = arith.constant 0 : index
      %19 = vector.load %arg5[%c0_15, %c0_16, %c0_17] : memref<1x3x1xf32, #tpu.memory_space<vmem>>, vector<1x3x1xf32>
      tpu.vector_store %arg5[%c0_15, %c0_16, %c0_17], %18 {strides = array<i32>} : memref<1x3x1xf32, #tpu.memory_space<vmem>>, vector<1x3x1xf32>,
    } else {
    }
    return
  }
  func.func @transform_0(%arg0: i32, %arg1: i32) -> (i32, i32, i32) {
    %c0_i32 = arith.constant 0 : i32
    %c0_i32_0 = arith.constant 0 : i32
    return %arg0, %c0_i32, %arg1 : i32, i32, i32
  }
  func.func @transform_1(%arg0: i32, %arg1: i32) -> (i32, i32) {
    %c0_i32 = arith.constant 0 : i32
    %c0_i32_0 = arith.constant 0 : i32
    %c0_i32_1 = arith.constant 0 : i32
    return %c0_i32, %c0_i32_0 : i32, i32
  }
  func.func @transform_2(%arg0: i32, %arg1: i32) -> (i32, i32) {
    %c0_i32 = arith.constant 0 : i32
    %c0_i32_0 = arith.constant 0 : i32
    %c0_i32_1 = arith.constant 0 : i32
    return %c0_i32, %c0_i32_0 : i32, i32
  }
  func.func @transform_3(%arg0: i32, %arg1: i32) -> (i32, i32, i32) {
    %c0_i32 = arith.constant 0 : i32
    %c0_i32_0 = arith.constant 0 : i32
    %c0_i32_1 = arith.constant 0 : i32
    return %arg0, %c0_i32, %c0_i32_0 : i32, i32, i32
  }
}

</mosaic_0001>

<bundles_post_ra>
// kernel: tpu_custom_call.1
= control target key start
LH: loop header
LB: loop body
LE: loop exit
PB: predicated region body
PF: predicated region fallthrough
CT: control target
= control target key end

     0   :  { %8 = vsyncpa [#allocation4], 0  ;;  %s734_s0 = inlined_call_operand.hbm [shape: f32[2,4,256], index: 0, kind: input, shape index: {}]   ;;  %s735_s1 = inlined_call_operand.vmem [shape: f32[3,4], index: 1, kind: input, shape index: {}]   ;;  %s736_s2 = inlined_call_operand.vmem [shape: f32[3,1], index: 2, kind: input, shape index: {}]   ;;  %s737_s3 = inlined_call_operand.vmem [shape: f32[2,3,1], index: 3, kind: output, shape index: {}]  }
   0x1   :  { %10 = vsyncpa [#allocation4 + $0x1], 0  ;;  %s598_s12 = smov 0   ;;  %s600_s13 = smov 0  }
   0x2   :  { %s602_s14 = smov 0   ;;  %s604_s15 = smov 0  }
   0x3   :  { %s606_s16 = smov 0   ;;  %s608_s17 = smov 0  }
   0x4   :  { %s610_s18 = smov 0   ;;  %s612_s19 = smov 0  }
   0x5 LB: > { %s381_s20 = sadd.s32 4294967295, %s572_s19   ;;  %s25_s21 = sadd.s32 1, %s564_s17  ;;  %s572_s19 = sphi %s612_s19, %s16_s19   ;;  %s568_s18 = sphi %s610_s18, %s747_s18   ;;  %s564_s17 = sphi %s608_s17, %s746_s17   ;;  %s560_s16 = sphi %s606_s16, %s745_s16   ;;  %s556_s15 = sphi %s604_s15, %s744_s15   ;;  %s552_s14 = sphi %s602_s14, %s743_s14   ;;  %s548_s13 = sphi %s600_s13, %s742_s13   ;;  %s544_s12 = sphi %s598_s12, %s741_s12  }
   0x6   : > { %p26_p0 = scmp.ge.s32.totalorder %s25_s21, 2  ;;  %s28_s22 = sadd.s32 1, %s568_s18 }
   0x7   : > { %s37_s23 = sadd.s32 1, %s552_s14  ;;  %p44_p1 = scmp.ne.s32.totalorder %s552_s14, %s548_s13 }
   0x8   : > { %s749_s21 = smov (%p26_p0, %s25_s21), 0  ;;  %s751_s22 = smov (!%p26_p0, %s28_s22), %s568_s18 }
   0x9   : > { %s33_s24 = ssub.s32 %s564_s17, %s749_s21  ;;  %p45_p2 = scmp.eq.s32.totalorder %s572_s19, 0 }
   0xa   : > { %p30_p3 = scmp.ge.s32.totalorder %s751_s22, 2  ;;  %p50_p4 = scmp.ne.s32.totalorder %s548_s13, %s544_s12 }
   0xb   : > { %p649_p5 = por %p45_p2, %p44_p1  ;;  %p51_p6 = scmp.eq.s32.totalorder %s381_s20, 0 }
   0xc   : > { %s753_s22 = smov (%p30_p3, %s751_s22), 0  ;;  %p410_p8 = scmp.lt.s32.totalorder %s572_s19, 4 }
   0xd   : > { %p655_p7 = por %p51_p6, %p50_p4  ;;  %s32_s27 = ssub.s32 %s568_s18, %s753_s22 }
   0xe   : > { %s34_s28 = sor.u32 %s33_s24, %s32_s27  ;;  %s148_s29 = sand.u32 1, %s552_s14  }
   0xf   : > { %p35_p9 = scmp.eq.s32.totalorder %s34_s28, 0  ;;  %s385_s30 = sshll.u32 %s148_s29, 2 }
  0x10   : > { %s386_s4 = sshll.u32 %s568_s18, 1  ;;  %s152_s8 = scalar_lea.vmem [#allocation3], %s385_s30 }
  0x11   : > { %s665_s5 = scalar_select %p35_p9, %s552_s14, %s37_s23  }
  0x12   : > { %s157_s6 = sadd.s32 %s564_s17, %s386_s4  ;;  %s161_s9 = sshll.u32 %s152_s8, 4  ;;  %s162_s9 = int_to_ptr.vmem [resolvable:$true] %s161_s9 }
  0x13   : > { %s387_s7 = sshll.u32 %s157_s6, 6  ;;  %p675_p10 = pnand %p410_p8, %p649_p5 }
  0x14   : > { %s159_s12 = scalar_lea.hbm %s734_s0, %s387_s7  ;;  %p388_p11 = scmp.ge.s32.totalorder %s572_s19, 1 }
  0x15   : > { %p166_p12 = scmp.lt.s32.totalorder %s572_s19, 5  ;;  %s149_s23 = scalar_lea.sflag [#allocation4], %s148_s29 }
  0x16   : > { %p480_p13 = pneg %p675_p10  ;;  %s491_s24 = scalar_lea.vmem %s162_s9, 64 }
  0x17   : > { %p492_p0 = scmp.ne.s32.totalorder %s162_s9, %s491_s24  ;;  %s574_s27 = smov [#allocation3]  }
  0x18   : > { %s496_s28 = sshll.u32 %s574_s27, 4  ;;  %s497_s28 = int_to_ptr.vmem [resolvable:$false] %s496_s28 }
  0x19   : > { %p494_p1 = pnand %p492_p0, %p480_p13  ;;  %s498_s30 = scalar_lea.vmem %s497_s28, 128 }
  0x1a   : > { %p499_p3 = scmp.lt.s32.totalorder %s162_s9, %s497_s28  ;;  %p500_p4 = scmp.lt.s32.totalorder %s498_s30, %s491_s24 }
  0x1b   : > { %p495_p2 = pneg %p494_p1 }
  0x1c   : > { %p501_p5 = por %p500_p4, %p499_p3 }
  0x1e   : > { %p502_p6 = pnand %p501_p5, %p495_p2 }
  0x20   : > { %505 = shalt.err (!%p502_p6)
}
  0x21   : > { %409 = dma.hbm_to_vmem [thread:$0]  (!%p675_p10), %s159_s12, 64, %s162_s9, %s149_s23  }
  0x22   : > { %p167_p8 = pnand %p388_p11, %p166_p12 }
  0x23   : > { %s172_s25 = sand.u32 (!%p167_p8), 1, %s548_s13  }
  0x24   : > { %170 = sbr.rel (%p167_p8) target bundleno = 399 (0x18f), region = 32  ;;  %s389_s29 = sshll.u32 (!%p167_p8), %s172_s25, 2 }
  0x25   : > { %s173_s4 = scalar_lea.sflag (!%p167_p8), [#allocation4], %s172_s25  ;;  %s176_s6 = scalar_lea.vmem (!%p167_p8), [#allocation3], %s389_s29 }
  0x29   : > { %539 = dma.done.wait (%p655_p7), %s173_s4, 64  }
  0x2a   : > { %541 = vsyncadd (%p655_p7), %s173_s4, 4294967232  ;;  %p198_p9 = scmp.lt.s32.totalorder %s560_s16, 1  ;;  %p391_p10 = scmp.ne.s32.totalorder %s556_s15, 0 }
  0x2c   : > { %s755_s16 = smov (!%p198_p9, %s560_s16), 1  ;;  %205 = sbr.rel (%p391_p10) target bundleno = 51 (0x33), region = 40 }
  0x2d   : > { %s390_s7 = sshll.u32 %s755_s16, 2 }
  0x2e   : > { %s699_s10 = scalar_lea.vmem %s737_s3, %s390_s7 }
  0x31   : > { %v575_v0 = vmov -inf  }
  0x32   : > { %206 = vst [vmem:[#allocation2] sm:$0x7] %v575_v0 }
  0x33 PF: > { %v208_v1 = vld [vmem:[%s176_s6] sm:$0xf]  ;;  %vm213_vm0 = vcmask 1043456   ;;  %vm209_vm1 = vcmask 31744   ;;  %v576_v2 = vmov 0.0   ;;  %vm577_vm2 = vmmov 0  }
  0x34   : > { %399 = vmatprep.subr.mxu0 %v576_v2  ;;  %401 = vmatprep.mubr.msk.f32.mxu0 %vm577_vm2, %v576_v2  ;;  %v207_v3 = vld [vmem:[%s735_s1] sm:$0x7]  ;;  %p394_p7 = scmp.ne.s32.totalorder %s556_s15, 1 }
  0x35   : > { %400 = vmatpush3.msk.msra.mxu0 %vm213_vm0, %v208_v1 }
  0x36   : > { %402 = vmatmul.mubr.msk.f32.vlgmr.msra.gmra.mxu0 %vm209_vm1, %v207_v3 }
  0x39   : > { %v287_v4 = vld [vmem:[#allocation2] sm:$0x7] }
  0xf5   : > { %293 = sbr.rel (%p394_p7) target bundleno = 399 (0x18f), region = 44 }
  0xf6   : > { %v283_v5 = vpop.f32.mrf.mxu0 }
  0xf7   : > { %v288_v6 = vmax.f32 %v287_v4, %v283_v5 }
  0xf8   : > { %v403_v7 = vpop.f32.mrf.mxu0 }
  0xf9   : > { %289 = vst [vmem:[#allocation2] sm:$0x7] %v288_v6 }
  0xfa   : > { %vm295_vm3 = vcmask 1042432   ;;  %v299_v10 = vld [vmem:[%s736_s2] sm:$0x7]  ;;  %vm301_vm4 = vcmask 2048  }
 0x100   : > { %v294_v8 = vld [vmem:[#allocation2] sm:$0x7] }
 0x101   : > { %v296_v9 = vsel %vm295_vm3, %v294_v8, -inf }
 0x102   : > { %297 = vmax.xlane.f32.xlu0 %v296_v9 }
 0x18b   : > { %v298_v11 = vpop.xlane.xlu0 %297 }
 0x18c   : > { %v300_v12 = vadd.f32 %v299_v10, %v298_v11 }
 0x18e   : > { %302 = vst.msk [vmem:[%s699_s10] sm:$0x7] %vm301_vm4, %v300_v12 }
 0x18f PF: > { %s16_s19 = sadd.s32 1, %s572_s19   ;;  %s741_s12 = smov %s548_s13 }
 0x190   : > { %p13_p11 = scmp.ge.s32.totalorder %s16_s19, 6   ;;  %s742_s13 = smov %s552_s14 }
 0x191   : > { %s743_s14 = smov %s665_s5  ;;  %s744_s15 = smov %s564_s17 }
 0x192   : > { %s745_s16 = smov %s568_s18  ;;  %s746_s17 = smov %s749_s21 }
 0x193   : > { %s747_s18 = smov %s753_s22  ;;  %15 = sbr.rel (!%p13_p11) target bundleno = 5 (0x5), region = 80 }
 0x198   :  { %322 = vsyncpa [#allocation4], 1 }
 0x199   :  { %324 = vsyncpa [#allocation4 + $0x1], 1 }

</bundles_post_ra>
